<compile_context>
chip_gen: v6e
topology: v6e:2x2x1
jax: 0.10.0
libtpu: 0.0.40
codegen_flags: <defaults>
</compile_context>

<pallas_src>
import functools
import numpy as np
import jax
import jax.numpy as jnp
from jax.experimental import pallas as pl
from jax.experimental.pallas import tpu as pltpu

# ------------------------- hyperparameters (small, consistent with module) -------------------------
BATCH = 2
SEQ = 16          # pad_size / sequence length
DIM_MODEL = 32    # dim_model
HIDDEN = 64       # FFN hidden
LN_EPS = 1e-5     # nn.LayerNorm default eps


# ------------------------- fused FFN kernel -------------------------

def _ffn_kernel(x_ref, w1_ref, w2_ref, vec_ref, o_ref, *, eps, dim, hidden, use_bf16):
    """Fused: fc1 -> ReLU -> fc2 -> (dropout=identity) -> +residual -> LayerNorm.

    x_ref:   [TM, D]  (rows of the flattened [B*S, D] input)
    w1_ref:  [D, H]
    w2_ref:  [H, D]
    vec_ref: [1, H + 3*D]  packed  b1 | b2 | ln_gamma | ln_beta
    o_ref:   [TM, D]
    """
    x = x_ref[...]                                    # [TM, D] f32

    # Static slices of the packed small-vector operand (single DMA for all four).
    b1 = vec_ref[:, pl.ds(0, hidden)]                 # [1, H]
    b2 = vec_ref[:, pl.ds(hidden, dim)]               # [1, D]
    g = vec_ref[:, pl.ds(hidden + dim, dim)]          # [1, D]
    bt = vec_ref[:, pl.ds(hidden + 2 * dim, dim)]     # [1, D]

    mm_dtype = jnp.bfloat16 if use_bf16 else jnp.float32

    # fc1 + ReLU (hidden activation stays in VMEM/vregs — never written to HBM).
    h = jnp.dot(x.astype(mm_dtype), w1_ref[...].astype(mm_dtype),
                preferred_element_type=jnp.float32)
    h = jnp.maximum(h + b1, 0.0)

    # fc2; dropout = identity (eval); residual add — all elementwise math in f32.
    y = jnp.dot(h.astype(mm_dtype), w2_ref[...].astype(mm_dtype),
                preferred_element_type=jnp.float32)
    y = y + b2 + x

    # LayerNorm over last dim (biased variance, matching torch.nn.LayerNorm).
    # Two independent row reductions -> the XLU reductions can overlap.
    inv_d = jnp.float32(1.0 / dim)
    s1 = jnp.sum(y, axis=-1, keepdims=True)
    s2 = jnp.sum(y * y, axis=-1, keepdims=True)
    mean = s1 * inv_d
    var = jnp.maximum(s2 * inv_d - mean * mean, 0.0)
    o_ref[...] = (y - mean) * jax.lax.rsqrt(var + eps) * g + bt


def _choose_tile_m(M, D, H, bytes_per=4, vmem_budget=16 << 20):
    """Row-tile TM sized against a conservative VMEM budget (v5e scoped default).

    Resident weights are single-buffered (index_map pins them to block (0,0));
    x/out tiles are double-buffered; the [TM, H] hidden activation lives in
    VMEM/vregs.  On v7x (64 MiB physical VMEM) this conservative budget is
    still safe; raise vmem_limit_bytes via pltpu.CompilerParams only if a
    larger TM is needed at real model sizes.
    """
    resident = (D * H + H * D + (H + 3 * D)) * bytes_per
    per_row = (2 * (D + D) + H + D) * bytes_per        # x/out double-buffered + h + y
    avail = max(vmem_budget - 2 * resident, vmem_budget // 8)
    tm = max(8, min(512, (avail // max(per_row, 1)) // 8 * 8))
    tm = min(tm, M)
    while M % tm != 0 and tm > 8:
        tm -= 8
    return tm if M % tm == 0 else M


def position_wise_feed_forward(x, params, eps=LN_EPS, use_bf16=True):
    """x: [B, S, D] -> [B, S, D].  One fused pallas_call, row-tiled grid over M."""
    B, S, D = x.shape
    M = B * S
    H = params["w1"].shape[1]
    x2 = x.reshape(M, D)
    vec = params["vec"]                                # [1, H + 3*D]

    tm = _choose_tile_m(M, D, H)
    grid = (pl.cdiv(M, tm),)

    flops = 2 * M * D * H + 2 * M * H * D + 10 * M * D
    bytes_accessed = 4 * (2 * M * D + D * H + H * D + (H + 3 * D))

    kernel = functools.partial(_ffn_kernel, eps=eps, dim=D, hidden=H,
                               use_bf16=use_bf16)
    out = pl.pallas_call(
        kernel,
        out_shape=jax.ShapeDtypeStruct((M, D), jnp.float32),
        grid=grid,
        in_specs=[
            pl.BlockSpec((tm, D), lambda i: (i, 0)),          # x rows (pipelined)
            pl.BlockSpec((D, H), lambda i: (0, 0)),           # w1 (resident)
            pl.BlockSpec((H, D), lambda i: (0, 0)),           # w2 (resident)
            pl.BlockSpec((1, H + 3 * D), lambda i: (0, 0)),   # packed b1|b2|g|beta
        ],
        out_specs=pl.BlockSpec((tm, D), lambda i: (i, 0)),
        compiler_params=pltpu.CompilerParams(
            dimension_semantics=("parallel",)),
        cost_estimate=pl.CostEstimate(
            flops=flops, transcendentals=M, bytes_accessed=bytes_accessed),
    )(x2, params["w1"], params["w2"], vec)
    return out.reshape(B, S, D)


# ------------------------- parameters (deterministic init, torch-style) -------------------------

def init_params(key):
    def lin_init(k, fan_in, fan_out):
        # torch nn.Linear default: U(-1/sqrt(fan_in), 1/sqrt(fan_in)); stored as [K, N]
        bound = 1.0 / np.sqrt(fan_in)
        kw, kb = jax.random.split(k)
        w = jax.random.uniform(kw, (fan_in, fan_out), jnp.float32, -bound, bound)
        b = jax.random.uniform(kb, (1, fan_out), jnp.float32, -bound, bound)
        return w, b

    k1, k2 = jax.random.split(key)
    w1, b1 = lin_init(k1, DIM_MODEL, HIDDEN)
    w2, b2 = lin_init(k2, HIDDEN, DIM_MODEL)
    ln_g = jnp.ones((1, DIM_MODEL), jnp.float32)
    ln_b = jnp.zeros((1, DIM_MODEL), jnp.float32)
    # Pack the four small vectors into one kernel operand (single DMA).
    vec = jnp.concatenate([b1, b2, ln_g, ln_b], axis=1)   # [1, H + 3*D]
    return {
        "w1": w1, "b1": b1,
        "w2": w2, "b2": b2,
        "ln_g": ln_g, "ln_b": ln_b,
        "vec": vec,
    }


# ------------------------- pure-JAX reference (for correctness check) -------------------------

def reference_ffn(x, p, eps=LN_EPS):
    h = jnp.maximum(x @ p["w1"] + p["b1"][0], 0.0)
    y = h @ p["w2"] + p["b2"][0]
    y = y + x
    mean = jnp.mean(y, axis=-1, keepdims=True)
    var = jnp.mean((y - mean) ** 2, axis=-1, keepdims=True)
    return (y - mean) * jax.lax.rsqrt(var + eps) * p["ln_g"][0] + p["ln_b"][0]


# ------------------------- main -------------------------

if __name__ == "__main__":
    key = jax.random.PRNGKey(0)
    k_param, k_x = jax.random.split(key)

    params = init_params(k_param)
    x = jax.random.normal(k_x, (BATCH, SEQ, DIM_MODEL), jnp.float32)

    ref = reference_ffn(x, params)

    # Default path: bf16 MXU inputs, f32 accumulation / elementwise (loosened tol).
    fwd_bf16 = jax.jit(functools.partial(position_wise_feed_forward, use_bf16=True))
    out_bf16 = fwd_bf16(x, params)
    jax.block_until_ready(out_bf16)
    assert out_bf16.shape == (BATCH, SEQ, DIM_MODEL)
    assert bool(jnp.all(jnp.isfinite(out_bf16)))
    np.testing.assert_allclose(np.asarray(out_bf16), np.asarray(ref),
                               rtol=5e-2, atol=5e-2)

    # Full-f32 MXU path: tight tolerance against the reference.
    fwd_f32 = jax.jit(functools.partial(position_wise_feed_forward, use_bf16=False))
    out_f32 = fwd_f32(x, params)
    jax.block_until_ready(out_f32)
    np.testing.assert_allclose(np.asarray(out_f32), np.asarray(ref),
                               rtol=1e-4, atol=1e-4)

    print("KERNEL_OK")
</pallas_src>

<mosaic_0001>
module attributes {stable_mosaic.version = 11 : i64} {
  func.func @_ffn_kernel(%arg0: i32, %arg1: memref<32x32xf32, #tpu.memory_space<vmem>>, %arg2: memref<32x64xf32, #tpu.memory_space<vmem>>, %arg3: memref<64x32xf32, #tpu.memory_space<vmem>>, %arg4: memref<1x160xf32, #tpu.memory_space<vmem>>, %arg5: memref<32x32xf32, #tpu.memory_space<vmem>>) attributes {dimension_semantics = [#tpu.dimension_semantics<parallel>], iteration_bounds = array<i64: 1>, scalar_prefetch = 0 : i64, scratch_operands = 0 : i64, tpu.core_type = #tpu.core_type<tc>, window_params = [{transform_indices = @transform_0, window_bounds = array<i64: 32, 32>}, {pipeline_mode = #tpu.pipeline_mode<synchronous>, transform_indices = @transform_1, window_bounds = array<i64: 32, 64>}, {pipeline_mode = #tpu.pipeline_mode<synchronous>, transform_indices = @transform_2, window_bounds = array<i64: 64, 32>}, {pipeline_mode = #tpu.pipeline_mode<synchronous>, transform_indices = @transform_3, window_bounds = array<i64: 1, 160>}, {transform_indices = @transform_4, window_bounds = array<i64: 32, 32>}]} {
    %c0 = arith.constant 0 : index
    %c0_0 = arith.constant 0 : index
    %0 = vector.load %arg1[%c0, %c0_0] : memref<32x32xf32, #tpu.memory_space<vmem>>, vector<32x32xf32>
    %c0_1 = arith.constant 0 : index
    %c0_2 = arith.constant 0 : index
    %1 = vector.load %arg4[%c0_1, %c0_2] : memref<1x160xf32, #tpu.memory_space<vmem>>, vector<1x64xf32>
    %c0_3 = arith.constant 0 : index
    %c64 = arith.constant 64 : index
    %2 = vector.load %arg4[%c0_3, %c64] : memref<1x160xf32, #tpu.memory_space<vmem>>, vector<1x32xf32>
    %c0_4 = arith.constant 0 : index
    %c96 = arith.constant 96 : index
    %3 = vector.load %arg4[%c0_4, %c96] : memref<1x160xf32, #tpu.memory_space<vmem>>, vector<1x32xf32>
    %c0_5 = arith.constant 0 : index
    %c128 = arith.constant 128 : index
    %4 = vector.load %arg4[%c0_5, %c128] : memref<1x160xf32, #tpu.memory_space<vmem>>, vector<1x32xf32>
    %5 = arith.truncf %0 : vector<32x32xf32> to vector<32x32xbf16>
    %c0_6 = arith.constant 0 : index
    %c0_7 = arith.constant 0 : index
    %6 = vector.load %arg2[%c0_6, %c0_7] : memref<32x64xf32, #tpu.memory_space<vmem>>, vector<32x64xf32>
    %7 = arith.truncf %6 : vector<32x64xf32> to vector<32x64xbf16>
    %cst = arith.constant dense<0.000000e+00> : vector<32x64xf32>
    %8 = tpu.matmul %5, %7, %cst {dimension_numbers = #tpu.dot_dimension_numbers<[1], [0], [0], [1], [0, 0, 1, 1], [], []>} : vector<32x32xbf16>, vector<32x64xbf16>, vector<32x64xf32> -> vector<32x64xf32>
    %9 = vector.broadcast %1 : vector<1x64xf32> to vector<32x64xf32>
    %10 = arith.addf %8, %9 : vector<32x64xf32>
    %cst_8 = arith.constant 0.000000e+00 : f32
    %11 = vector.broadcast %cst_8 : f32 to vector<32x64xf32>
    %12 = arith.maximumf %10, %11 : vector<32x64xf32>
    %13 = arith.truncf %12 : vector<32x64xf32> to vector<32x64xbf16>
    %c0_9 = arith.constant 0 : index
    %c0_10 = arith.constant 0 : index
    %14 = vector.load %arg3[%c0_9, %c0_10] : memref<64x32xf32, #tpu.memory_space<vmem>>, vector<64x32xf32>
    %15 = arith.truncf %14 : vector<64x32xf32> to vector<64x32xbf16>
    %cst_11 = arith.constant dense<0.000000e+00> : vector<32x32xf32>
    %16 = tpu.matmul %13, %15, %cst_11 {dimension_numbers = #tpu.dot_dimension_numbers<[1], [0], [0], [1], [0, 0, 1, 1], [], []>} : vector<32x64xbf16>, vector<64x32xbf16>, vector<32x32xf32> -> vector<32x32xf32>
    %17 = vector.broadcast %2 : vector<1x32xf32> to vector<32x32xf32>
    %18 = arith.addf %16, %17 : vector<32x32xf32>
    %19 = arith.addf %18, %0 : vector<32x32xf32>
    %cst_12 = arith.constant dense<0.000000e+00> : vector<32xf32>
    %20 = vector.multi_reduction <add>, %19, %cst_12 [1] : vector<32x32xf32> to vector<32xf32>
    %21 = vector.shape_cast %20 : vector<32xf32> to vector<32x1xf32>
    %22 = arith.mulf %19, %19 : vector<32x32xf32>
    %cst_13 = arith.constant dense<0.000000e+00> : vector<32xf32>
    %23 = vector.multi_reduction <add>, %22, %cst_13 [1] : vector<32x32xf32> to vector<32xf32>
    %24 = vector.shape_cast %23 : vector<32xf32> to vector<32x1xf32>
    %cst_14 = arith.constant 3.125000e-02 : f32
    %25 = vector.broadcast %cst_14 : f32 to vector<32x1xf32>
    %26 = arith.mulf %21, %25 : vector<32x1xf32>
    %cst_15 = arith.constant 3.125000e-02 : f32
    %27 = vector.broadcast %cst_15 : f32 to vector<32x1xf32>
    %28 = arith.mulf %24, %27 : vector<32x1xf32>
    %29 = arith.mulf %26, %26 : vector<32x1xf32>
    %30 = arith.subf %28, %29 : vector<32x1xf32>
    %cst_16 = arith.constant 0.000000e+00 : f32
    %31 = vector.broadcast %cst_16 : f32 to vector<32x1xf32>
    %32 = arith.maximumf %30, %31 : vector<32x1xf32>
    %33 = vector.broadcast %26 : vector<32x1xf32> to vector<32x32xf32>
    %34 = arith.subf %19, %33 : vector<32x32xf32>
    %cst_17 = arith.constant 9.99999974E-6 : f32
    %35 = vector.broadcast %cst_17 : f32 to vector<32x1xf32>
    %36 = arith.addf %32, %35 : vector<32x1xf32>
    %37 = math.rsqrt %36 : vector<32x1xf32>
    %38 = vector.broadcast %37 : vector<32x1xf32> to vector<32x32xf32>
    %39 = arith.mulf %34, %38 : vector<32x32xf32>
    %40 = vector.broadcast %3 : vector<1x32xf32> to vector<32x32xf32>
    %41 = arith.mulf %39, %40 : vector<32x32xf32>
    %42 = vector.broadcast %4 : vector<1x32xf32> to vector<32x32xf32>
    %43 = arith.addf %41, %42 : vector<32x32xf32>
    %c0_18 = arith.constant 0 : index
    %c0_19 = arith.constant 0 : index
    %44 = vector.load %arg5[%c0_18, %c0_19] : memref<32x32xf32, #tpu.memory_space<vmem>>, vector<32x32xf32>
    tpu.vector_store %arg5[%c0_18, %c0_19], %43 {strides = array<i32>} : memref<32x32xf32, #tpu.memory_space<vmem>>, vector<32x32xf32>,
    return
  }
  func.func @transform_0(%arg0: i32) -> (i32, i32) {
    %c0_i32 = arith.constant 0 : i32
    %c0_i32_0 = arith.constant 0 : i32
    return %arg0, %c0_i32 : i32, i32
  }
  func.func @transform_1(%arg0: i32) -> (i32, i32) {
    %c0_i32 = arith.constant 0 : i32
    %c0_i32_0 = arith.constant 0 : i32
    %c0_i32_1 = arith.constant 0 : i32
    return %c0_i32, %c0_i32_0 : i32, i32
  }
  func.func @transform_2(%arg0: i32) -> (i32, i32) {
    %c0_i32 = arith.constant 0 : i32
    %c0_i32_0 = arith.constant 0 : i32
    %c0_i32_1 = arith.constant 0 : i32
    return %c0_i32, %c0_i32_0 : i32, i32
  }
  func.func @transform_3(%arg0: i32) -> (i32, i32) {
    %c0_i32 = arith.constant 0 : i32
    %c0_i32_0 = arith.constant 0 : i32
    %c0_i32_1 = arith.constant 0 : i32
    return %c0_i32, %c0_i32_0 : i32, i32
  }
  func.func @transform_4(%arg0: i32) -> (i32, i32) {
    %c0_i32 = arith.constant 0 : i32
    %c0_i32_0 = arith.constant 0 : i32
    return %arg0, %c0_i32 : i32, i32
  }
}

</mosaic_0001>

<bundles_post_ra>
// kernel: position_wise_feed_forward.1
= control target key start
LH: loop header
LB: loop body
LE: loop exit
PB: predicated region body
PF: predicated region fallthrough
CT: control target
= control target key end

     0   :  { %vm39_vm0 = vcmask 261120   ;;  %s477_s0 = inlined_call_operand.vmem [shape: f32[32,32], index: 0, kind: input, shape index: {}]   ;;  %s478_s1 = inlined_call_operand.vmem [shape: f32[32,64], index: 1, kind: input, shape index: {}]   ;;  %s479_s2 = inlined_call_operand.vmem [shape: f32[64,32], index: 2, kind: input, shape index: {}]   ;;  %s480_s3 = inlined_call_operand.vmem [shape: f32[1,160], index: 3, kind: input, shape index: {}]   ;;  %s481_s4 = inlined_call_operand.hbm [shape: f32[32,32], index: 4, kind: output, shape index: {}]  }
   0x1   :  { %v29_v0 = vld [vmem:[%s478_s1 + $0x10] sm:$0xff]  ;;  %v30_v1 = vld [vmem:[%s478_s1 + $0x18] sm:$0xff]  ;;  %v27_v2 = vld [vmem:[%s478_s1] sm:$0xff] }
   0x2   :  { %v32_v3 = vpack.c.bf16 %v30_v1, %v29_v0  ;;  %v28_v4 = vld [vmem:[%s478_s1 + $0x8] sm:$0xff]  ;;  %v19_v5 = vld [vmem:[%s477_s0] sm:$0xff]  ;;  %v107_v9 = vld [vmem:[%s479_s2 + $0x30] sm:$0xff] }
   0x3   :  { %v396_v6 = vld [vmem:[%s477_s0 + $0x8] sm:$0xff]  ;;  %v31_v7 = vpack.c.bf16 %v28_v4, %v27_v2  ;;  %v108_v10 = vld [vmem:[%s479_s2 + $0x38] sm:$0xff] }
   0x4   :  { %v25_v8 = vpack.c.bf16 %v396_v6, %v19_v5  ;;  %293 = vmatprep.subr.bf16.mxu0 %v32_v3 }
   0x5   :  { %9 = vsyncpa [#allocation3], 0  ;;  %294 = vmatpush3.bf16.msra.mxu0 %v32_v3  ;;  %v21_v11 = vld [vmem:[%s477_s0 + $0x10] sm:$0xff]  ;;  %v22_v12 = vld [vmem:[%s477_s0 + $0x18] sm:$0xff]  ;;  %v112_v13 = vpack.c.bf16 %v108_v10, %v107_v9  ;;  %s348_s21 = smov 64   ;;  %vm116_vm1 = vcmask 523264  }
   0x6   :  { %297 = vmatprep.mubr.msk.bf16.mxu0 %vm39_vm0, %v25_v8  ;;  %295 = vmatprep.subr.bf16.mxu0 %v31_v7  ;;  %v26_v14 = vpack.c.bf16 %v22_v12, %v21_v11  ;;  %v105_v15 = vld [vmem:[%s479_s2 + $0x20] sm:$0xff]  ;;  %v106_v16 = vld [vmem:[%s479_s2 + $0x28] sm:$0xff]  ;;  %v103_v18 = vld [vmem:[%s479_s2 + $0x10] sm:$0xff] }
   0x7   :  { %301 = vmatprep.subr.bf16.mxu1 %v112_v13  ;;  %v111_v17 = vpack.c.bf16 %v106_v16, %v105_v15  ;;  %v104_v19 = vld [vmem:[%s479_s2 + $0x18] sm:$0xff]  ;;  %v101_v21 = vld [vmem:[%s479_s2] sm:$0xff]  ;;  %v102_v22 = vld [vmem:[%s479_s2 + $0x8] sm:$0xff]  ;;  %s349_s2 = smov 32  }
   0x8   :  { %302 = vmatpush3.bf16.msra.mxu1 %v112_v13  ;;  %v110_v20 = vpack.c.bf16 %v104_v19, %v103_v18  ;;  %v109_v23 = vpack.c.bf16 %v102_v22, %v101_v21  ;;  %v277_v24 = vld [vmem:[%s480_s3] ss:$0 sm:$0xff] }
   0x9   :  { %296 = vmatpush3.bf16.msra.mxu0 %v31_v7  ;;  %303 = vmatprep.subr.bf16.mxu1 %v111_v17 }
   0xa   :  { %113 = vrot.lane.b32.xlu0 %v277_v24, %s348_s21 }
   0xc   :  { %298 = vmatmul.mubr.msk.bf16.vlgmr.msra.gmra.mxu0 %vm39_vm0, %v26_v14  ;;  %304 = vmatpush3.bf16.msra.mxu1 %v111_v17 }
   0xd   :  { %305 = vmatprep.subr.bf16.mxu1 %v110_v20 }
  0x10   :  { %306 = vmatpush3.bf16.msra.mxu1 %v110_v20 }
  0x11   :  { %307 = vmatprep.subr.bf16.mxu1 %v109_v23 }
  0x14   :  { %308 = vmatpush3.bf16.msra.mxu1 %v109_v23 }
  0x7c   :  { %v114_v39 = vpop.permute.xlu0 %113 }
  0xcc   :  { %v299_v25 = vpop.f32.mrf.mxu0 }
  0xcd   :  { %v89_v30 = vadd.f32 %v299_v25, %v277_v24 }
  0xce   :  { %v80_v26 = vpop.f32.mrf.mxu0 }
  0xcf   :  { %v81_v28 = vadd.f32 %v277_v24, %v80_v26  ;;  %v97_v36 = vmax.f32 %v89_v30, 0.0 }
  0xd0   :  { %v300_v27 = vpop.f32.mrf.mxu0 }
  0xd1   :  { %v92_v29 = vadd.f32 %v300_v27, %v277_v24  ;;  %v95_v34 = vmax.f32 %v81_v28, 0.0 }
  0xd2   :  { %v83_v31 = vpop.f32.mrf.mxu0 }
  0xd3   :  { %v84_v32 = vadd.f32 %v277_v24, %v83_v31  ;;  %v98_v33 = vmax.f32 %v92_v29, 0.0 }
  0xd5   :  { %v96_v35 = vmax.f32 %v84_v32, 0.0  ;;  %v100_v38 = vpack.c.bf16 %v98_v33, %v97_v36  ;;  %v282_v33 = vld [vmem:[%s480_s3 + $0x1] ss:$0 sm:$0xff]  ;;  %s350_s3 = smov [#allocation2]  }
  0xd6   :  { %s266_s24 = sshll.u32 %s350_s3, 4  ;;  %s267_s24 = int_to_ptr.vmem [resolvable:$true] %s266_s24 }
  0xd7   :  { %v99_v37 = vpack.c.bf16 %v96_v35, %v95_v34  ;;  %s326_s25 = scalar_lea.vmem %s267_s24, 512  ;;  %p331_p1 = scmp.lt.s32.totalorder %s267_s24, %s267_s24 }
  0xd8   :  { %p327_p0 = scmp.ne.s32.totalorder %s267_s24, %s326_s25  ;;  %p332_p2 = scmp.lt.s32.totalorder %s326_s25, %s326_s25 }
  0xd9   :  { %309 = vmatprep.mubr.msk.bf16.mxu1 %vm116_vm1, %v99_v37 }
  0xda   :  { %310 = vmatmul.mubr.msk.bf16.vlgmr.msra.gmra.mxu1 %vm116_vm1, %v100_v38  ;;  %p333_p3 = por %p332_p2, %p331_p1 }
  0xdc   :  { %p334_p4 = pnand %p333_p3, %p327_p0 }
 0x19a   :  { %v311_v40 = vpop.f32.mrf.mxu1 }
 0x19b   :  { %v166_v41 = vadd.f32 %v311_v40, %v114_v39 }
 0x19c   :  { %v157_v42 = vpop.f32.mrf.mxu1 }
 0x19d   :  { %v434_v43 = vadd.f32 %v166_v41, %v21_v11  ;;  %v158_v44 = vadd.f32 %v157_v42, %v114_v39 }
 0x19e   :  { %v312_v45 = vpop.f32.mrf.mxu1 }
 0x19f   :  { %v436_v46 = vadd.f32 %v158_v44, %v19_v5  ;;  %v169_v47 = vadd.f32 %v312_v45, %v114_v39  ;;  %v182_v48 = vsel %vm39_vm0, %v434_v43, 0.0  ;;  %v190_v49 = vmul.f32 %v434_v43, %v434_v43 }
 0x1a0   :  { %183 = vadd.xlane.f32.xlu1 %v182_v48  ;;  %v160_v53 = vpop.f32.mrf.mxu1 }
 0x1a1   :  { %v176_v50 = vsel %vm39_vm0, %v436_v46, 0.0  ;;  %v444_v51 = vadd.f32 %v169_v47, %v22_v12  ;;  %v198_v52 = vsel %vm39_vm0, %v190_v49, 0.0  ;;  %v161_v54 = vadd.f32 %v160_v53, %v114_v39 }
 0x1a2   :  { %177 = vadd.xlane.f32.xlu0 %v176_v50  ;;  %v188_v56 = vmul.f32 %v436_v46, %v436_v46 }
 0x1a3   :  { %v185_v55 = vsel %vm39_vm0, %v444_v51, 0.0  ;;  %v452_v57 = vadd.f32 %v161_v54, %v396_v6  ;;  %v191_v60 = vmul.f32 %v444_v51, %v444_v51 }
 0x1a4   :  { %199 = vadd.xlane.f32.xlu1 %v198_v52  ;;  %v192_v58 = vsel %vm39_vm0, %v188_v56, 0.0 }
 0x1a5   :  { %v179_v59 = vsel %vm39_vm0, %v452_v57, 0.0  ;;  %v201_v61 = vsel %vm39_vm0, %v191_v60, 0.0  ;;  %v189_v62 = vmul.f32 %v452_v57, %v452_v57 }
 0x1a7   :  { %v195_v63 = vsel %vm39_vm0, %v189_v62, 0.0 }
 0x1a8   :  { %186 = vadd.xlane.f32.xlu1 %v185_v55 }
 0x1ac   :  { %193 = vadd.xlane.f32.xlu1 %v192_v58 }
 0x1b0   :  { %180 = vadd.xlane.f32.xlu1 %v179_v59 }
 0x1b4   :  { %202 = vadd.xlane.f32.xlu1 %v201_v61 }
 0x1b8   :  { %196 = vadd.xlane.f32.xlu1 %v195_v63 }
 0x1c9   :  { %240 = vrot.lane.b32.xlu1 %v277_v24, %s349_s2 }
 0x229   :  { %v184_v0 = vpop.xlane.xlu1 %183 }
 0x22a   :  { %v206_v1 = vmul.f32 0.03125, %v184_v0 }
 0x22b   :  { %v178_v5 = vpop.xlane.xlu0 %177 }
 0x22c   :  { %v214_v3 = vmul.f32 %v206_v1, %v206_v1  ;;  %v204_v8 = vmul.f32 0.03125, %v178_v5  ;;  %v226_v25 = vsub.f32 %v434_v43, %v206_v1 }
 0x22d   :  { %v200_v2 = vpop.xlane.xlu1 %199 }
 0x22e   :  { %v210_v4 = vmul.f32 0.03125, %v200_v2  ;;  %v212_v12 = vmul.f32 %v204_v8, %v204_v8  ;;  %v224_v39 = vsub.f32 %v436_v46, %v204_v8 }
 0x230   :  { %v218_v6 = vsub.f32 %v210_v4, %v214_v3 }
 0x231   :  { %v187_v7 = vpop.xlane.xlu1 %186 }
 0x232   :  { %v222_v9 = vmax.f32 %v218_v6, 0.0  ;;  %v207_v16 = vmul.f32 0.03125, %v187_v7 }
 0x234   :  { %v230_v10 = vadd.f32 1e-05, %v222_v9  ;;  %v215_v20 = vmul.f32 %v207_v16, %v207_v16  ;;  %v227_v44 = vsub.f32 %v444_v51, %v207_v16 }
 0x235   :  { %v194_v11 = vpop.xlane.xlu1 %193 }
 0x236   :  { %318 = vrsqrt.f32 %v230_v10  ;;  %v208_v13 = vmul.f32 0.03125, %v194_v11 }
 0x238   :  { %v216_v14 = vsub.f32 %v208_v13, %v212_v12 }
 0x239   :  { %v181_v15 = vpop.xlane.xlu1 %180 }
 0x23a   :  { %v220_v17 = vmax.f32 %v216_v14, 0.0  ;;  %v205_v21 = vmul.f32 0.03125, %v181_v15 }
 0x23c   :  { %v228_v18 = vadd.f32 1e-05, %v220_v17  ;;  %v213_v26 = vmul.f32 %v205_v21, %v205_v21  ;;  %v225_v48 = vsub.f32 %v452_v57, %v205_v21 }
 0x23d   :  { %v203_v19 = vpop.xlane.xlu1 %202 }
 0x23e   :  { %320 = vrsqrt.f32 %v228_v18  ;;  %v211_v22 = vmul.f32 0.03125, %v203_v19 }
 0x240   :  { %v219_v23 = vsub.f32 %v211_v22, %v215_v20 }
 0x241   :  { %v197_v24 = vpop.xlane.xlu1 %196 }
 0x242   :  { %v223_v27 = vmax.f32 %v219_v23, 0.0  ;;  %v209_v28 = vmul.f32 0.03125, %v197_v24 }
 0x243   :  { %v319_v29 = vpop.eup %318 }
 0x244   :  { %v231_v30 = vadd.f32 1e-05, %v223_v27  ;;  %v217_v31 = vsub.f32 %v209_v28, %v213_v26  ;;  %v238_v32 = vmul.f32 %v319_v29, %v226_v25 }
 0x245   :  { %v241_v34 = vpop.permute.xlu1 %240 }
 0x246   :  { %322 = vrsqrt.f32 %v231_v30  ;;  %v221_v35 = vmax.f32 %v217_v31, 0.0  ;;  %v245_v36 = vmul.f32 %v241_v34, %v238_v32 }
 0x248   :  { %v229_v37 = vadd.f32 1e-05, %v221_v35  ;;  %v255_v38 = vadd.f32 %v282_v33, %v245_v36 }
 0x24a   :  { %324 = vrsqrt.f32 %v229_v37  ;;  %259 = vst.msk [vmem:[#allocation2 + $0x10] sm:$0xff] %vm39_vm0, %v255_v38 }
 0x24b   :  { %v321_v40 = vpop.eup %320 }
 0x24c   :  { %v236_v41 = vmul.f32 %v321_v40, %v224_v39 }
 0x24e   :  { %v243_v42 = vmul.f32 %v241_v34, %v236_v41 }
 0x250   :  { %v253_v43 = vadd.f32 %v282_v33, %v243_v42 }
 0x252   :  { %257 = vst.msk [vmem:[#allocation2] sm:$0xff] %vm39_vm0, %v253_v43 }
 0x253   :  { %v323_v45 = vpop.eup %322 }
 0x254   :  { %v239_v47 = vmul.f32 %v323_v45, %v227_v44 }
 0x256   :  { %v246_v49 = vmul.f32 %v241_v34, %v239_v47 }
 0x257   :  { %v325_v50 = vpop.eup %324 }
 0x258   :  { %v237_v52 = vmul.f32 %v325_v50, %v225_v48  ;;  %v256_v53 = vadd.f32 %v282_v33, %v246_v49 }
 0x25a   :  { %v244_v46 = vmul.f32 %v241_v34, %v237_v52  ;;  %260 = vst.msk [vmem:[#allocation2 + $0x18] sm:$0xff] %vm39_vm0, %v256_v53 }
 0x25c   :  { %v254_v54 = vadd.f32 %v282_v33, %v244_v46 }
 0x25e   :  { %258 = vst.msk [vmem:[#allocation2 + $0x8] sm:$0xff] %vm39_vm0, %v254_v54 }
 0x25f   :  { %337 = shalt.err (!%p334_p4)
}
 0x260   :  { %s351_s26 = smov 128   ;;  %s352_s27 = smov 8  }
 0x261   :  { %272 = dma.vmem_to_hbm [thread:$0]  %s267_s24, 512, %s481_s4, [#allocation3], %s351_s26, %s351_s26, %s352_s27  }
 0x262   :  { %346 = dma.done.wait [#allocation3], 512  }
 0x263   :  { %347 = vsyncadd [#allocation3], 4294966784 }
 0x264   :  { %276 = vsyncpa [#allocation3], 1 }

</bundles_post_ra>
